<compile_context>
chip_gen: v7x
topology: tpu7x:2x2x1
jax: 0.10.0
libtpu: 0.0.40
codegen_flags: <defaults>
</compile_context>

<pallas_src>
import functools

import numpy as np
import jax
import jax.numpy as jnp
from jax import lax
from jax.experimental import pallas as pl
from jax.experimental.pallas import tpu as pltpu


# bf16 operands on the MXU (native on v5e/v6e/v7x); accumulation is always f32.
MXU_DTYPE = jnp.bfloat16


def _rup(n, m):
    return -(-n // m) * m


# ----------------------------------------------------------------------------
# Pallas kernels
# ----------------------------------------------------------------------------
def conv_avgpool_kernel(p_ref, w_ref, b_ref, o_ref):
    """Fused Conv2d(VALID) + AvgPool2d(2,2) on one lane tile.

    Pooling is folded into the patches (linearity), so this is one lane-dense
    MXU matmul with the batch folded into the lane dimension.

    p_ref: (CK, LT)    pre-pooled im2col patch tile (lane tile of all samples)
    w_ref: (Cout, CK)  flattened conv weights (resident across the lane grid)
    b_ref: (Cout, 1)   bias (exact to add after pooling)
    o_ref: (Cout, LT)  pooled conv output tile
    """
    acc = jnp.dot(w_ref[...], p_ref[...], preferred_element_type=jnp.float32)
    o_ref[...] = (acc + b_ref[...]).astype(o_ref.dtype)


def mlp_kernel(x_ref, w0_ref, b0_ref, w1_ref, b1_ref, w2_ref, b2_ref, o_ref):
    """Fused fc -> relu -> fc1 -> relu -> fc2 on a tile of batch rows.

    Weights are pre-transposed and zero-padded to lane-dense widths (128/128/256);
    all matmuls accumulate in f32 regardless of MXU_DTYPE.
    """
    h = jnp.dot(x_ref[...], w0_ref[...], preferred_element_type=jnp.float32) + b0_ref[...]
    h = jnp.maximum(h, 0.0).astype(w1_ref.dtype)
    h = jnp.dot(h, w1_ref[...], preferred_element_type=jnp.float32) + b1_ref[...]
    h = jnp.maximum(h, 0.0).astype(w2_ref.dtype)
    out = jnp.dot(h, w2_ref[...], preferred_element_type=jnp.float32) + b2_ref[...]
    o_ref[...] = out.astype(o_ref.dtype)


# ----------------------------------------------------------------------------
# Plain-JAX glue (all fused by XLA under the single jit)
# ----------------------------------------------------------------------------
def _pooled_patches_cm(x_cm, KH, KW):
    """Pre-pooled im2col from a CHANNEL-MAJOR activation (C, N, H, W).

    Returns P of shape (C*KH*KW, N*Hp*Wp) with
        P[(c,kh,kw), n*Hp*Wp + hp*Wp + wp] =
            mean_{dh,dw in {0,1}} x[c, n, 2*hp + kh + dh, 2*wp + kw + dw]
    so that  avgpool2x2(conv(x) + b) == W.reshape(Cout, C*KH*KW) @ P + b.
    Built directly in (CK, N*Q) order: no full-patch transpose/relayout.
    """
    C, N, H, W = x_cm.shape
    x32 = x_cm.astype(jnp.float32)
    Hout, Wout = H - KH + 1, W - KW + 1
    Hp, Wp = Hout // 2, Wout // 2
    # stride-1 2x2 average (4 adds, fused by XLA)
    y = 0.25 * (x32[:, :, :-1, :-1] + x32[:, :, :-1, 1:] +
                x32[:, :, 1:, :-1] + x32[:, :, 1:, 1:])           # (C, N, H-1, W-1)
    cols = [y[:, :, kh:kh + 2 * Hp:2, kw:kw + 2 * Wp:2]           # (C, N, Hp, Wp)
            for kh in range(KH) for kw in range(KW)]
    p = jnp.stack(cols, axis=1)                                   # (C, KH*KW, N, Hp, Wp)
    p = p.reshape(C * KH * KW, N * Hp * Wp)
    return p, (Hp, Wp)


def _lane_tiling(total, cap=1024):
    """Lane-dim tiling: pad `total` up to a multiple of 128, tile <= cap (cap is a
    multiple of 128), total padded to a multiple of the tile.  Bounds VMEM per
    grid step at any batch size and keeps stores lane-dense."""
    padded = _rup(total, 128)
    tile = min(padded, cap)
    padded = _rup(padded, tile)
    return tile, padded


def _batch_tiling(n, cap=256):
    """Batch-row tiling for the MLP: pad up to a multiple of 8 (never a <8-row
    block), tile capped at 256 (MXU M rows), pad batch to a multiple of the tile."""
    npad = _rup(max(n, 1), 8)
    bt = min(npad, cap)
    npad = _rup(npad, bt)
    return bt, npad


def conv_avgpool_cm(x_cm, wmat, bcol, kh, kw, *, lane_cap=1024):
    """x_cm: (Cin, N, H, W) channel-major; wmat: (Cout, Cin*kh*kw); bcol: (Cout, 1)
    -> (Cout, N, Hp, Wp) channel-major == avgpool2x2(conv2d_valid(x) + b)."""
    Cin, N, H, W = x_cm.shape
    Cout, CK = wmat.shape
    assert CK == Cin * kh * kw

    p, (Hp, Wp) = _pooled_patches_cm(x_cm, kh, kw)     # (CK, N*Hp*Wp) f32
    total = N * Hp * Wp
    lt, padded = _lane_tiling(total, lane_cap)
    if padded != total:
        p = jnp.pad(p, ((0, 0), (0, padded - total)))  # zero lanes, sliced off below

    out = pl.pallas_call(
        conv_avgpool_kernel,
        out_shape=jax.ShapeDtypeStruct((Cout, padded), MXU_DTYPE),
        grid=(padded // lt,),
        in_specs=[
            pl.BlockSpec((CK, lt), lambda i: (0, i)),     # patch lane tile
            pl.BlockSpec((Cout, CK), lambda i: (0, 0)),   # weights (resident)
            pl.BlockSpec((Cout, 1), lambda i: (0, 0)),    # bias (resident)
        ],
        out_specs=pl.BlockSpec((Cout, lt), lambda i: (0, i)),
        compiler_params=pltpu.CompilerParams(dimension_semantics=("parallel",)),
    )(p.astype(MXU_DTYPE), wmat, bcol)

    return out[:, :total].reshape(Cout, N, Hp, Wp)      # channel-major, no transpose


def mlp(flat, prep, num_classes):
    """flat: (N, fc_input) -> (N, num_classes). Fused fc/relu/fc1/relu/fc2 kernel
    with lane-dense padded widths and a parallel batch-row grid."""
    N, F = flat.shape
    H0 = prep["fc_wT"].shape[1]
    H1 = prep["fc1_wT"].shape[1]
    H2 = prep["fc2_wT"].shape[1]
    bt, npad = _batch_tiling(N)
    if npad != N:
        flat = jnp.pad(flat, ((0, npad - N), (0, 0)))

    out = pl.pallas_call(
        mlp_kernel,
        out_shape=jax.ShapeDtypeStruct((npad, H2), jnp.float32),
        grid=(npad // bt,),
        in_specs=[
            pl.BlockSpec((bt, F), lambda i: (i, 0)),
            pl.BlockSpec((F, H0), lambda i: (0, 0)),
            pl.BlockSpec((1, H0), lambda i: (0, 0)),
            pl.BlockSpec((H0, H1), lambda i: (0, 0)),
            pl.BlockSpec((1, H1), lambda i: (0, 0)),
            pl.BlockSpec((H1, H2), lambda i: (0, 0)),
            pl.BlockSpec((1, H2), lambda i: (0, 0)),
        ],
        out_specs=pl.BlockSpec((bt, H2), lambda i: (i, 0)),
        compiler_params=pltpu.CompilerParams(dimension_semantics=("parallel",)),
    )(flat.astype(MXU_DTYPE), prep["fc_wT"], prep["fc_b"],
      prep["fc1_wT"], prep["fc1_b"], prep["fc2_wT"], prep["fc2_b"])

    return out[:N, :num_classes]


@functools.partial(jax.jit, static_argnames=("filter_size", "num_classes"))
def lenet_forward(x, prep, *, filter_size, num_classes):
    fs = filter_size
    N = x.shape[0]
    x_cm = jnp.transpose(x, (1, 0, 2, 3))                               # (3, N, H, W), tiny
    a1 = conv_avgpool_cm(x_cm, prep["conv1_w"], prep["conv1_b"], fs, fs)  # (8,  N, 14, 14)
    a2 = conv_avgpool_cm(a1, prep["conv2_w"], prep["conv2_b"], fs, fs)    # (16, N,  5,  5)
    # Only remaining relayout: 16*N*25 values, negligible. Matches torch .view order.
    flat = jnp.transpose(a2, (1, 0, 2, 3)).reshape(N, -1)               # (N, 400)
    return mlp(flat, prep, num_classes)
    # TODO(synk): conv2+flatten+MLP could be fused into one pallas_call, but the
    # in-kernel sublane->lane flatten is not robustly lowerable; the intermediate
    # here is only 16*N*25 bf16 so the extra HBM round trip is negligible.


def prepare_params(params):
    """One-time layout prep OUTSIDE the jitted forward: flatten conv weights,
    zero-pad conv1 Cout (6->8) and conv2 Cin to match, pre-transpose FC weights
    and zero-pad FC lane dims to multiples of 128, cast MXU operands to bf16."""
    def pad_axis(a, axis, target):
        pad = [(0, 0)] * a.ndim
        pad[axis] = (0, target - a.shape[axis])
        return jnp.pad(a, pad)

    c1_out = params["conv1_w"].shape[0]
    c1_out_p = _rup(c1_out, 8)                       # 6 -> 8 (zero rows: exact)
    c2_out = params["conv2_w"].shape[0]              # 16, already a sublane multiple

    conv1_w = pad_axis(params["conv1_w"].reshape(c1_out, -1), 0, c1_out_p)
    conv1_b = pad_axis(params["conv1_b"].reshape(-1, 1), 0, c1_out_p)
    conv2_w = pad_axis(params["conv2_w"], 1, c1_out_p).reshape(c2_out, -1)
    conv2_b = params["conv2_b"].reshape(-1, 1)

    h0 = _rup(params["fc_w"].shape[0], 128)          # 120 -> 128
    h1 = _rup(params["fc1_w"].shape[0], 128)         # 84  -> 128
    h2 = _rup(params["fc2_w"].shape[0], 128)         # 200 -> 256

    fc_wT = pad_axis(params["fc_w"].T, 1, h0)
    fc_b = pad_axis(params["fc_b"].reshape(1, -1), 1, h0)
    fc1_wT = pad_axis(pad_axis(params["fc1_w"].T, 0, h0), 1, h1)
    fc1_b = pad_axis(params["fc1_b"].reshape(1, -1), 1, h1)
    fc2_wT = pad_axis(pad_axis(params["fc2_w"].T, 0, h1), 1, h2)
    fc2_b = pad_axis(params["fc2_b"].reshape(1, -1), 1, h2)

    return {
        "conv1_w": conv1_w.astype(MXU_DTYPE), "conv1_b": conv1_b.astype(jnp.float32),
        "conv2_w": conv2_w.astype(MXU_DTYPE), "conv2_b": conv2_b.astype(jnp.float32),
        "fc_wT": fc_wT.astype(MXU_DTYPE), "fc_b": fc_b.astype(jnp.float32),
        "fc1_wT": fc1_wT.astype(MXU_DTYPE), "fc1_b": fc1_b.astype(jnp.float32),
        "fc2_wT": fc2_wT.astype(MXU_DTYPE), "fc2_b": fc2_b.astype(jnp.float32),
    }


# ----------------------------------------------------------------------------
# Pure-JAX f32 reference (sanity check of the Pallas implementation)
# ----------------------------------------------------------------------------
def lenet_reference(x, params):
    def conv(x, w, b):
        y = lax.conv_general_dilated(x, w, (1, 1), "VALID",
                                     dimension_numbers=("NCHW", "OIHW", "NCHW"))
        return y + b[None, :, None, None]

    def pool(x):
        s = lax.reduce_window(x, 0.0, lax.add, (1, 1, 2, 2), (1, 1, 2, 2), "VALID")
        return s / 4.0

    x = pool(conv(x, params["conv1_w"], params["conv1_b"]))
    x = pool(conv(x, params["conv2_w"], params["conv2_b"]))
    x = x.reshape(x.shape[0], -1)
    x = jnp.maximum(x @ params["fc_w"].T + params["fc_b"], 0.0)
    x = jnp.maximum(x @ params["fc1_w"].T + params["fc1_b"], 0.0)
    return x @ params["fc2_w"].T + params["fc2_b"]


# ----------------------------------------------------------------------------
# Parameter init + main
# ----------------------------------------------------------------------------
def init_params(key, filter_size=5, fc_input=400):
    ks = jax.random.split(key, 10)

    def u(k, shape, fan_in):
        bound = 1.0 / np.sqrt(fan_in)
        return jax.random.uniform(k, shape, jnp.float32, -bound, bound)

    fs = filter_size
    return {
        "conv1_w": u(ks[0], (6, 3, fs, fs), 3 * fs * fs),
        "conv1_b": u(ks[1], (6,), 3 * fs * fs),
        "conv2_w": u(ks[2], (16, 6, fs, fs), 6 * fs * fs),
        "conv2_b": u(ks[3], (16,), 6 * fs * fs),
        "fc_w":    u(ks[4], (120, fc_input), fc_input),
        "fc_b":    u(ks[5], (120,), fc_input),
        "fc1_w":   u(ks[6], (84, 120), 120),
        "fc1_b":   u(ks[7], (84,), 120),
        "fc2_w":   u(ks[8], (200, 84), 84),
        "fc2_b":   u(ks[9], (200,), 84),
    }


if __name__ == "__main__":
    # Classic LeNet configuration: filter_size=5, 32x32 input -> fc_input=16*5*5=400
    filter_size, fc_input, num_classes = 5, 400, 200
    key = jax.random.PRNGKey(0)
    k_x, k_p = jax.random.split(key)

    x = jax.random.normal(k_x, (2, 3, 32, 32), jnp.float32)   # NCHW, batch=2
    params = init_params(k_p, filter_size, fc_input)
    prep = prepare_params(params)

    out = lenet_forward(x, prep, filter_size=filter_size, num_classes=num_classes)
    out = jax.block_until_ready(out)
    assert out.shape == (2, num_classes), out.shape

    ref = jax.block_until_ready(lenet_reference(x, params))
    tol = 1e-3 if MXU_DTYPE == jnp.float32 else 2e-2   # bf16 MXU operands
    np.testing.assert_allclose(np.asarray(out), np.asarray(ref), rtol=tol, atol=tol)

    print("KERNEL_OK")
</pallas_src>

<mosaic_0001>
module attributes {stable_mosaic.version = 11 : i64} {
  func.func @conv_avgpool_kernel(%arg0: i32, %arg1: memref<75x512xbf16, #tpu.memory_space<vmem>>, %arg2: memref<8x75xbf16, #tpu.memory_space<vmem>>, %arg3: memref<8x1xf32, #tpu.memory_space<vmem>>, %arg4: memref<8x512xbf16, #tpu.memory_space<vmem>>) attributes {dimension_semantics = [#tpu.dimension_semantics<parallel>], iteration_bounds = array<i64: 1>, scalar_prefetch = 0 : i64, scratch_operands = 0 : i64, tpu.core_type = #tpu.core_type<tc>, window_params = [{transform_indices = @transform_0, window_bounds = array<i64: 75, 512>}, {pipeline_mode = #tpu.pipeline_mode<synchronous>, transform_indices = @transform_1, window_bounds = array<i64: 8, 75>}, {pipeline_mode = #tpu.pipeline_mode<synchronous>, transform_indices = @transform_2, window_bounds = array<i64: 8, 1>}, {transform_indices = @transform_3, window_bounds = array<i64: 8, 512>}]} {
    %c0 = arith.constant 0 : index
    %c0_0 = arith.constant 0 : index
    %0 = vector.load %arg2[%c0, %c0_0] : memref<8x75xbf16, #tpu.memory_space<vmem>>, vector<8x75xbf16>
    %c0_1 = arith.constant 0 : index
    %c0_2 = arith.constant 0 : index
    %1 = vector.load %arg1[%c0_1, %c0_2] : memref<75x512xbf16, #tpu.memory_space<vmem>>, vector<75x512xbf16>
    %cst = arith.constant dense<0.000000e+00> : vector<8x512xf32>
    %2 = tpu.matmul %0, %1, %cst {dimension_numbers = #tpu.dot_dimension_numbers<[1], [0], [0], [1], [0, 0, 1, 1], [], []>} : vector<8x75xbf16>, vector<75x512xbf16>, vector<8x512xf32> -> vector<8x512xf32>
    %c0_3 = arith.constant 0 : index
    %c0_4 = arith.constant 0 : index
    %3 = vector.load %arg3[%c0_3, %c0_4] : memref<8x1xf32, #tpu.memory_space<vmem>>, vector<8x1xf32>
    %4 = vector.broadcast %3 : vector<8x1xf32> to vector<8x512xf32>
    %5 = arith.addf %2, %4 : vector<8x512xf32>
    %6 = arith.truncf %5 : vector<8x512xf32> to vector<8x512xbf16>
    %c0_5 = arith.constant 0 : index
    %c0_6 = arith.constant 0 : index
    %7 = vector.load %arg4[%c0_5, %c0_6] : memref<8x512xbf16, #tpu.memory_space<vmem>>, vector<8x512xbf16>
    tpu.vector_store %arg4[%c0_5, %c0_6], %6 {strides = array<i32>} : memref<8x512xbf16, #tpu.memory_space<vmem>>, vector<8x512xbf16>,
    return
  }
  func.func @transform_0(%arg0: i32) -> (i32, i32) {
    %c0_i32 = arith.constant 0 : i32
    %c0_i32_0 = arith.constant 0 : i32
    return %c0_i32, %arg0 : i32, i32
  }
  func.func @transform_1(%arg0: i32) -> (i32, i32) {
    %c0_i32 = arith.constant 0 : i32
    %c0_i32_0 = arith.constant 0 : i32
    %c0_i32_1 = arith.constant 0 : i32
    return %c0_i32, %c0_i32_0 : i32, i32
  }
  func.func @transform_2(%arg0: i32) -> (i32, i32) {
    %c0_i32 = arith.constant 0 : i32
    %c0_i32_0 = arith.constant 0 : i32
    %c0_i32_1 = arith.constant 0 : i32
    return %c0_i32, %c0_i32_0 : i32, i32
  }
  func.func @transform_3(%arg0: i32) -> (i32, i32) {
    %c0_i32 = arith.constant 0 : i32
    %c0_i32_0 = arith.constant 0 : i32
    return %c0_i32, %arg0 : i32, i32
  }
}

module attributes {stable_mosaic.version = 11 : i64} {
  func.func @conv_avgpool_kernel(%arg0: i32, %arg1: memref<200x128xbf16, #tpu.memory_space<vmem>>, %arg2: memref<16x200xbf16, #tpu.memory_space<vmem>>, %arg3: memref<16x1xf32, #tpu.memory_space<vmem>>, %arg4: memref<16x128xbf16, #tpu.memory_space<vmem>>) attributes {dimension_semantics = [#tpu.dimension_semantics<parallel>], iteration_bounds = array<i64: 1>, scalar_prefetch = 0 : i64, scratch_operands = 0 : i64, tpu.core_type = #tpu.core_type<tc>, window_params = [{transform_indices = @transform_0, window_bounds = array<i64: 200, 128>}, {pipeline_mode = #tpu.pipeline_mode<synchronous>, transform_indices = @transform_1, window_bounds = array<i64: 16, 200>}, {pipeline_mode = #tpu.pipeline_mode<synchronous>, transform_indices = @transform_2, window_bounds = array<i64: 16, 1>}, {transform_indices = @transform_3, window_bounds = array<i64: 16, 128>}]} {
    %c0 = arith.constant 0 : index
    %c0_0 = arith.constant 0 : index
    %0 = vector.load %arg2[%c0, %c0_0] : memref<16x200xbf16, #tpu.memory_space<vmem>>, vector<16x200xbf16>
    %c0_1 = arith.constant 0 : index
    %c0_2 = arith.constant 0 : index
    %1 = vector.load %arg1[%c0_1, %c0_2] : memref<200x128xbf16, #tpu.memory_space<vmem>>, vector<200x128xbf16>
    %cst = arith.constant dense<0.000000e+00> : vector<16x128xf32>
    %2 = tpu.matmul %0, %1, %cst {dimension_numbers = #tpu.dot_dimension_numbers<[1], [0], [0], [1], [0, 0, 1, 1], [], []>} : vector<16x200xbf16>, vector<200x128xbf16>, vector<16x128xf32> -> vector<16x128xf32>
    %c0_3 = arith.constant 0 : index
    %c0_4 = arith.constant 0 : index
    %3 = vector.load %arg3[%c0_3, %c0_4] : memref<16x1xf32, #tpu.memory_space<vmem>>, vector<16x1xf32>
    %4 = vector.broadcast %3 : vector<16x1xf32> to vector<16x128xf32>
    %5 = arith.addf %2, %4 : vector<16x128xf32>
    %6 = arith.truncf %5 : vector<16x128xf32> to vector<16x128xbf16>
    %c0_5 = arith.constant 0 : index
    %c0_6 = arith.constant 0 : index
    %7 = vector.load %arg4[%c0_5, %c0_6] : memref<16x128xbf16, #tpu.memory_space<vmem>>, vector<16x128xbf16>
    tpu.vector_store %arg4[%c0_5, %c0_6], %6 {strides = array<i32>} : memref<16x128xbf16, #tpu.memory_space<vmem>>, vector<16x128xbf16>,
    return
  }
  func.func @transform_0(%arg0: i32) -> (i32, i32) {
    %c0_i32 = arith.constant 0 : i32
    %c0_i32_0 = arith.constant 0 : i32
    return %c0_i32, %arg0 : i32, i32
  }
  func.func @transform_1(%arg0: i32) -> (i32, i32) {
    %c0_i32 = arith.constant 0 : i32
    %c0_i32_0 = arith.constant 0 : i32
    %c0_i32_1 = arith.constant 0 : i32
    return %c0_i32, %c0_i32_0 : i32, i32
  }
  func.func @transform_2(%arg0: i32) -> (i32, i32) {
    %c0_i32 = arith.constant 0 : i32
    %c0_i32_0 = arith.constant 0 : i32
    %c0_i32_1 = arith.constant 0 : i32
    return %c0_i32, %c0_i32_0 : i32, i32
  }
  func.func @transform_3(%arg0: i32) -> (i32, i32) {
    %c0_i32 = arith.constant 0 : i32
    %c0_i32_0 = arith.constant 0 : i32
    return %c0_i32, %arg0 : i32, i32
  }
}

module attributes {stable_mosaic.version = 11 : i64} {
  func.func @mlp_kernel(%arg0: i32, %arg1: memref<8x400xbf16, #tpu.memory_space<vmem>>, %arg2: memref<400x128xbf16, #tpu.memory_space<vmem>>, %arg3: memref<1x128xf32, #tpu.memory_space<vmem>>, %arg4: memref<128x128xbf16, #tpu.memory_space<vmem>>, %arg5: memref<1x128xf32, #tpu.memory_space<vmem>>, %arg6: memref<128x256xbf16, #tpu.memory_space<vmem>>, %arg7: memref<1x256xf32, #tpu.memory_space<vmem>>, %arg8: memref<8x256xf32, #tpu.memory_space<vmem>>) attributes {dimension_semantics = [#tpu.dimension_semantics<parallel>], iteration_bounds = array<i64: 1>, scalar_prefetch = 0 : i64, scratch_operands = 0 : i64, tpu.core_type = #tpu.core_type<tc>, window_params = [{transform_indices = @transform_0, window_bounds = array<i64: 8, 400>}, {pipeline_mode = #tpu.pipeline_mode<synchronous>, transform_indices = @transform_1, window_bounds = array<i64: 400, 128>}, {pipeline_mode = #tpu.pipeline_mode<synchronous>, transform_indices = @transform_2, window_bounds = array<i64: 1, 128>}, {pipeline_mode = #tpu.pipeline_mode<synchronous>, transform_indices = @transform_3, window_bounds = array<i64: 128, 128>}, {pipeline_mode = #tpu.pipeline_mode<synchronous>, transform_indices = @transform_4, window_bounds = array<i64: 1, 128>}, {pipeline_mode = #tpu.pipeline_mode<synchronous>, transform_indices = @transform_5, window_bounds = array<i64: 128, 256>}, {pipeline_mode = #tpu.pipeline_mode<synchronous>, transform_indices = @transform_6, window_bounds = array<i64: 1, 256>}, {transform_indices = @transform_7, window_bounds = array<i64: 8, 256>}]} {
    %c0 = arith.constant 0 : index
    %c0_0 = arith.constant 0 : index
    %0 = vector.load %arg1[%c0, %c0_0] : memref<8x400xbf16, #tpu.memory_space<vmem>>, vector<8x400xbf16>
    %c0_1 = arith.constant 0 : index
    %c0_2 = arith.constant 0 : index
    %1 = vector.load %arg2[%c0_1, %c0_2] : memref<400x128xbf16, #tpu.memory_space<vmem>>, vector<400x128xbf16>
    %cst = arith.constant dense<0.000000e+00> : vector<8x128xf32>
    %2 = tpu.matmul %0, %1, %cst {dimension_numbers = #tpu.dot_dimension_numbers<[1], [0], [0], [1], [0, 0, 1, 1], [], []>} : vector<8x400xbf16>, vector<400x128xbf16>, vector<8x128xf32> -> vector<8x128xf32>
    %c0_3 = arith.constant 0 : index
    %c0_4 = arith.constant 0 : index
    %3 = vector.load %arg3[%c0_3, %c0_4] : memref<1x128xf32, #tpu.memory_space<vmem>>, vector<1x128xf32>
    %4 = vector.broadcast %3 : vector<1x128xf32> to vector<8x128xf32>
    %5 = arith.addf %2, %4 : vector<8x128xf32>
    %cst_5 = arith.constant 0.000000e+00 : f32
    %6 = vector.broadcast %cst_5 : f32 to vector<8x128xf32>
    %7 = arith.maximumf %5, %6 : vector<8x128xf32>
    %8 = arith.truncf %7 : vector<8x128xf32> to vector<8x128xbf16>
    %c0_6 = arith.constant 0 : index
    %c0_7 = arith.constant 0 : index
    %9 = vector.load %arg4[%c0_6, %c0_7] : memref<128x128xbf16, #tpu.memory_space<vmem>>, vector<128x128xbf16>
    %cst_8 = arith.constant dense<0.000000e+00> : vector<8x128xf32>
    %10 = tpu.matmul %8, %9, %cst_8 {dimension_numbers = #tpu.dot_dimension_numbers<[1], [0], [0], [1], [0, 0, 1, 1], [], []>} : vector<8x128xbf16>, vector<128x128xbf16>, vector<8x128xf32> -> vector<8x128xf32>
    %c0_9 = arith.constant 0 : index
    %c0_10 = arith.constant 0 : index
    %11 = vector.load %arg5[%c0_9, %c0_10] : memref<1x128xf32, #tpu.memory_space<vmem>>, vector<1x128xf32>
    %12 = vector.broadcast %11 : vector<1x128xf32> to vector<8x128xf32>
    %13 = arith.addf %10, %12 : vector<8x128xf32>
    %cst_11 = arith.constant 0.000000e+00 : f32
    %14 = vector.broadcast %cst_11 : f32 to vector<8x128xf32>
    %15 = arith.maximumf %13, %14 : vector<8x128xf32>
    %16 = arith.truncf %15 : vector<8x128xf32> to vector<8x128xbf16>
    %c0_12 = arith.constant 0 : index
    %c0_13 = arith.constant 0 : index
    %17 = vector.load %arg6[%c0_12, %c0_13] : memref<128x256xbf16, #tpu.memory_space<vmem>>, vector<128x256xbf16>
    %cst_14 = arith.constant dense<0.000000e+00> : vector<8x256xf32>
    %18 = tpu.matmul %16, %17, %cst_14 {dimension_numbers = #tpu.dot_dimension_numbers<[1], [0], [0], [1], [0, 0, 1, 1], [], []>} : vector<8x128xbf16>, vector<128x256xbf16>, vector<8x256xf32> -> vector<8x256xf32>
    %c0_15 = arith.constant 0 : index
    %c0_16 = arith.constant 0 : index
    %19 = vector.load %arg7[%c0_15, %c0_16] : memref<1x256xf32, #tpu.memory_space<vmem>>, vector<1x256xf32>
    %20 = vector.broadcast %19 : vector<1x256xf32> to vector<8x256xf32>
    %21 = arith.addf %18, %20 : vector<8x256xf32>
    %c0_17 = arith.constant 0 : index
    %c0_18 = arith.constant 0 : index
    %22 = vector.load %arg8[%c0_17, %c0_18] : memref<8x256xf32, #tpu.memory_space<vmem>>, vector<8x256xf32>
    tpu.vector_store %arg8[%c0_17, %c0_18], %21 {strides = array<i32>} : memref<8x256xf32, #tpu.memory_space<vmem>>, vector<8x256xf32>,
    return
  }
  func.func @transform_0(%arg0: i32) -> (i32, i32) {
    %c0_i32 = arith.constant 0 : i32
    %c0_i32_0 = arith.constant 0 : i32
    return %arg0, %c0_i32 : i32, i32
  }
  func.func @transform_1(%arg0: i32) -> (i32, i32) {
    %c0_i32 = arith.constant 0 : i32
    %c0_i32_0 = arith.constant 0 : i32
    %c0_i32_1 = arith.constant 0 : i32
    return %c0_i32, %c0_i32_0 : i32, i32
  }
  func.func @transform_2(%arg0: i32) -> (i32, i32) {
    %c0_i32 = arith.constant 0 : i32
    %c0_i32_0 = arith.constant 0 : i32
    %c0_i32_1 = arith.constant 0 : i32
    return %c0_i32, %c0_i32_0 : i32, i32
  }
  func.func @transform_3(%arg0: i32) -> (i32, i32) {
    %c0_i32 = arith.constant 0 : i32
    %c0_i32_0 = arith.constant 0 : i32
    %c0_i32_1 = arith.constant 0 : i32
    return %c0_i32, %c0_i32_0 : i32, i32
  }
  func.func @transform_4(%arg0: i32) -> (i32, i32) {
    %c0_i32 = arith.constant 0 : i32
    %c0_i32_0 = arith.constant 0 : i32
    %c0_i32_1 = arith.constant 0 : i32
    return %c0_i32, %c0_i32_0 : i32, i32
  }
  func.func @transform_5(%arg0: i32) -> (i32, i32) {
    %c0_i32 = arith.constant 0 : i32
    %c0_i32_0 = arith.constant 0 : i32
    %c0_i32_1 = arith.constant 0 : i32
    return %c0_i32, %c0_i32_0 : i32, i32
  }
  func.func @transform_6(%arg0: i32) -> (i32, i32) {
    %c0_i32 = arith.constant 0 : i32
    %c0_i32_0 = arith.constant 0 : i32
    %c0_i32_1 = arith.constant 0 : i32
    return %c0_i32, %c0_i32_0 : i32, i32
  }
  func.func @transform_7(%arg0: i32) -> (i32, i32) {
    %c0_i32 = arith.constant 0 : i32
    %c0_i32_0 = arith.constant 0 : i32
    return %arg0, %c0_i32 : i32, i32
  }
}

</mosaic_0001>

<bundles_post_ra>
// kernel: lenet_forward.3
= control target key start
LH: loop header
LB: loop body
LE: loop exit
PB: predicated region body
PF: predicated region fallthrough
CT: control target
= control target key end

     0   :  { %v321_v1 = vmov 0   ;;  %vm142_vm0 = vcmask 1044480   ;;  %vm143_vm1 = vcmask 1045504   ;;  %v322_v10 = vmov 65535   ;;  %s415_s0 = inlined_call_operand.vmem [shape: bf16[75,512], index: 0, kind: input, shape index: {}]   ;;  %s416_s2 = inlined_call_operand.vmem [shape: f32[8,1], index: 2, kind: input, shape index: {}]   ;;  %s417_s1 = inlined_call_operand.vmem [shape: bf16[8,75], index: 1, kind: input, shape index: {}]   ;;  %s418_s3 = inlined_call_operand.vmem [shape: bf16[8,512], index: 3, kind: output, shape index: {}]  }
   0x1   :  { %v291_v0 = vld [vmem:[%s415_s0 + $0x4] ss:$16 sps:$4 sm:$0xff]   ;;  %190 = vmatprep.mubr.bf16.mxu0 %v321_v1  ;;  %231 = vmatprep.mubr.bf16.mxu1 %v321_v1  ;;  %v293_v2 = vld [vmem:[%s415_s0 + $0xc] ss:$16 sps:$4 sm:$0xff]   ;;  %v295_v3 = vld [vmem:[%s415_s0] ss:$16 sps:$4 sm:$0xff]  }
   0x2   :  { %290 = vset.pattern.permute.xlu0 %v321_v1  ;;  %158 = vmatprep.subr.bf16.mxu0 %v291_v0  ;;  %v296_v4 = vld [vmem:[%s415_s0 + $0x8] ss:$16 sps:$4 sm:$0xff]   ;;  %v297_v5 = vld [vmem:[%s415_s0 + $0x24] ss:$16 sps:$4 sm:$0xff]   ;;  %v299_v6 = vld [vmem:[%s415_s0 + $0x2c] ss:$16 sps:$4 sm:$0xff]  }
   0x3   :  { %199 = vmatprep.subr.bf16.mxu1 %v293_v2  ;;  %159 = vmatpush1.bf16.msra.mxu0 %v295_v3  ;;  %v301_v7 = vld [vmem:[%s415_s0 + $0x20] ss:$16 sps:$4 sm:$0xff]   ;;  %v302_v8 = vld [vmem:[%s415_s0 + $0x28] ss:$16 sps:$4 sm:$0xff]   ;;  %v303_v9 = vld [vmem:[%s415_s0 + $0x44] ss:$16 sps:$4 sm:$0xff]  }
   0x4   :  { %200 = vmatpush1.bf16.msra.mxu1 %v296_v4  ;;  %160 = vmatprep.subr.bf16.mxu0 %v297_v5  ;;  %v144_v11 = vsel %vm142_vm0, 4294967295, %v322_v10  ;;  %v305_v12 = vld [vmem:[%s415_s0 + $0x4c] ss:$16 sps:$4 sm:$0xff]   ;;  %v307_v13 = vld [vmem:[%s415_s0 + $0x40] ss:$16 sps:$4 sm:$0xff]   ;;  %vm138_vm2 = vcmask 613376  }
   0x5   :  { %201 = vmatprep.subr.bf16.mxu1 %v299_v6  ;;  %v308_v14 = vld [vmem:[%s415_s0 + $0x48] ss:$16 sps:$4 sm:$0xff]   ;;  %v309_v15 = vld [vmem:[%s415_s0 + $0x64] ss:$16 sps:$4 sm:$0xff]   ;;  %v311_v16 = vld [vmem:[%s415_s0 + $0x6c] ss:$16 sps:$4 sm:$0xff]  }
   0x6   :  { %v313_v17 = vld [vmem:[%s415_s0 + $0x60] ss:$16 sps:$4 sm:$0xff]   ;;  %v314_v18 = vld [vmem:[%s415_s0 + $0x68] ss:$16 sps:$4 sm:$0xff]   ;;  %v145_v19 = vsel %vm143_vm1, %v144_v11, 0 }
   0x7   :  { %161 = vmatpush1.bf16.msra.mxu0 %v301_v7  ;;  %v315_v20 = vld [vmem:[%s415_s0 + $0x84] ss:$16 sps:$4 sm:$0x3f]   ;;  %v317_v21 = vld [vmem:[%s415_s0 + $0x8c] ss:$16 sps:$4 sm:$0x3f]  }
   0x8   :  { %202 = vmatpush1.bf16.msra.mxu1 %v302_v8  ;;  %162 = vmatprep.subr.bf16.mxu0 %v303_v9  ;;  %v36_v22 = vld [vmem:[%s416_s2] sm:$0xff]  ;;  %v150_v23 = vand.u32 %v315_v20, %v145_v19  ;;  %v320_v25 = vld [vmem:[%s415_s0 + $0x88] ss:$16 sps:$4 sm:$0x3f]   ;;  %v156_v26 = vand.u32 %v317_v21, %v145_v19 }
   0x9   :  { %203 = vmatprep.subr.bf16.mxu1 %v305_v12  ;;  %v319_v24 = vld [vmem:[%s415_s0 + $0x80] ss:$16 sps:$4 sm:$0x3f]   ;;  %39 = vperm.xlu0 %290, %v36_v22   ;;  %v153_v28 = vand.u32 %v320_v25, %v145_v19 }
   0xa   :  { %v147_v27 = vand.u32 %v319_v24, %v145_v19  ;;  %v15_v29 = vld [vmem:[%s417_s1] sm:$0xf] }
   0xb   :  { %163 = vmatpush1.bf16.msra.mxu0 %v307_v13 }
   0xc   :  { %204 = vmatpush1.bf16.msra.mxu1 %v308_v14  ;;  %164 = vmatprep.subr.bf16.mxu0 %v309_v15 }
   0xd   :  { %205 = vmatprep.subr.bf16.mxu1 %v311_v16 }
   0xf   :  { %165 = vmatpush1.bf16.msra.mxu0 %v313_v17 }
  0x10   :  { %206 = vmatpush1.bf16.msra.mxu1 %v314_v18  ;;  %166 = vmatprep.subr.bf16.mxu0 %v150_v23 }
  0x11   :  { %207 = vmatprep.subr.bf16.mxu1 %v156_v26 }
  0x13   :  { %167 = vmatpush1.bf16.msra.mxu0 %v147_v27 }
  0x14   :  { %208 = vmatpush1.bf16.msra.mxu1 %v153_v28 }
  0x16   :  { %282 = vmatmul.mubr.msk.bf16.vlgmr.msra.gmra.mrb[0].mxu0 %vm138_vm2, %v15_v29 }
  0x17   :  { %283 = vmatmul.mubr.msk.bf16.vlgmr.msra.gmra.mrb[0].mxu1 %vm138_vm2, %v15_v29 }
  0x88   :  { %v40_v30 = vpop.permute.xlu0 %39 }
  0xe9   :  { %v192_v31 = vpop.f32.mrb[0].mxu0 }
  0xea   :  { %v233_v32 = vpop.f32.mrb[0].mxu1  ;;  %v193_v33 = vadd.f32 %v192_v31, %v40_v30  ;;  %v194_v35 = vpop.f32.mrb[1].mxu0 }
  0xeb   :  { %v234_v34 = vadd.f32 %v233_v32, %v40_v30  ;;  %v235_v36 = vpop.f32.mrb[1].mxu1  ;;  %v195_v37 = vadd.f32 %v194_v35, %v40_v30  ;;  %v196_v39 = vpop.f32.mrb[2].mxu0 }
  0xec   :  { %v236_v38 = vadd.f32 %v235_v36, %v40_v30  ;;  %v237_v40 = vpop.f32.mrb[2].mxu1  ;;  %v197_v41 = vpop.f32.mrb[3].mxu0 }
  0xed   :  { %v238_v42 = vpop.f32.mrb[3].mxu1  ;;  %v286_v43 = vpack.c.bf16 %v195_v37, %v193_v33 }
  0xee   :  { %v287_v44 = vpack.c.bf16 %v236_v38, %v234_v34 }
  0xef   :  { %256 = vst [vmem:[%s418_s3] sm:$0xff] %v286_v43 }
  0xf0   :  { %257 = vst [vmem:[%s418_s3 + $0x8] sm:$0xff] %v287_v44 }

// kernel: lenet_forward.4
= control target key start
LH: loop header
LB: loop body
LE: loop exit
PB: predicated region body
PF: predicated region fallthrough
CT: control target
= control target key end

     0   :  { %v244_v0 = vmov 0   ;;  %vm138_vm0 = vcmask 588800   ;;  %vm142_vm1 = vcmask 1043456   ;;  %s319_s0 = inlined_call_operand.vmem [shape: bf16[200,128], index: 0, kind: input, shape index: {}]   ;;  %s320_s1 = inlined_call_operand.vmem [shape: bf16[16,200], index: 1, kind: input, shape index: {}]   ;;  %s321_s2 = inlined_call_operand.vmem [shape: f32[16,1], index: 2, kind: input, shape index: {}]   ;;  %s322_s3 = inlined_call_operand.vmem [shape: bf16[16,128], index: 3, kind: output, shape index: {}]  }
   0x1   :  { %146 = vmatprep.subr.bf16.mxu0 %v244_v0  ;;  %v228_v1 = vld [vmem:[%s319_s0] sm:$0xff]   ;;  %227 = vset.pattern.permute.xlu0 %v244_v0  ;;  %v229_v2 = vld [vmem:[%s319_s0 + $0x8] sm:$0xff]   ;;  %v230_v3 = vld [vmem:[%s319_s0 + $0x10] sm:$0xff]  }
   0x2   :  { %147 = vmatpush1.bf16.msra.mxu0 %v228_v1  ;;  %v231_v4 = vld [vmem:[%s319_s0 + $0x18] sm:$0xff]   ;;  %v243_v5 = vld [vmem:[%s320_s1 + $0x4] ss:$8 sps:$4 sm:$0xff]   ;;  %v234_v10 = vld [vmem:[%s319_s0 + $0x30] sm:$0xff]  }
   0x3   :  { %148 = vmatprep.subr.bf16.mxu0 %v244_v0  ;;  %v232_v6 = vld [vmem:[%s319_s0 + $0x20] sm:$0xff]   ;;  %216 = vmatprep.mubr.msk.bf16.mxu0 %vm138_vm0, %v243_v5  ;;  %v43_v8 = vld [vmem:[%s321_s2 + $0x8] sm:$0xff]  ;;  %v235_v11 = vld [vmem:[%s319_s0 + $0x38] sm:$0xff]  }
   0x4   :  { %v42_v7 = vld [vmem:[%s321_s2] sm:$0xff]  ;;  %v233_v9 = vld [vmem:[%s319_s0 + $0x28] sm:$0xff]   ;;  %v238_v14 = vld [vmem:[%s319_s0 + $0x50] sm:$0xff]  }
   0x5   :  { %46 = vperm.xlu0 %227, %v42_v7   ;;  %v236_v12 = vld [vmem:[%s319_s0 + $0x40] sm:$0xff]   ;;  %v237_v13 = vld [vmem:[%s319_s0 + $0x48] sm:$0xff]   ;;  %v239_v15 = vld [vmem:[%s319_s0 + $0x58] sm:$0xff]  }
   0x6   :  { %149 = vmatpush1.bf16.msra.mxu0 %v229_v2  ;;  %v240_v16 = vld [vmem:[%s319_s0 + $0x60] ss:$0 sps:$4 sm:$0xff]  }
   0x7   :  { %150 = vmatprep.subr.bf16.mxu0 %v244_v0  ;;  %v144_v17 = vsel %vm142_vm1, %v240_v16, 0  ;;  %v241_v18 = vld [vmem:[%s320_s1] ss:$8 sps:$4 sm:$0xff]  }
   0x9   :  { %51 = vperm.xlu0 %227, %v43_v8  }
   0xa   :  { %151 = vmatpush1.bf16.msra.mxu0 %v230_v3 }
   0xb   :  { %152 = vmatprep.subr.bf16.mxu0 %v244_v0 }
   0xe   :  { %153 = vmatpush1.bf16.msra.mxu0 %v231_v4 }
   0xf   :  { %154 = vmatprep.subr.bf16.mxu0 %v244_v0 }
  0x12   :  { %155 = vmatpush1.bf16.msra.mxu0 %v232_v6 }
  0x13   :  { %156 = vmatprep.subr.bf16.mxu0 %v244_v0 }
  0x16   :  { %157 = vmatpush1.bf16.msra.mxu0 %v233_v9 }
  0x17   :  { %158 = vmatprep.subr.bf16.mxu0 %v244_v0 }
  0x1a   :  { %159 = vmatpush1.bf16.msra.mxu0 %v234_v10 }
  0x1b   :  { %160 = vmatprep.subr.bf16.mxu0 %v244_v0 }
  0x1e   :  { %161 = vmatpush1.bf16.msra.mxu0 %v235_v11 }
  0x1f   :  { %162 = vmatprep.subr.bf16.mxu0 %v244_v0 }
  0x22   :  { %163 = vmatpush1.bf16.msra.mxu0 %v236_v12 }
  0x23   :  { %164 = vmatprep.subr.bf16.mxu0 %v244_v0 }
  0x26   :  { %165 = vmatpush1.bf16.msra.mxu0 %v237_v13 }
  0x27   :  { %166 = vmatprep.subr.bf16.mxu0 %v244_v0 }
  0x2a   :  { %167 = vmatpush1.bf16.msra.mxu0 %v238_v14 }
  0x2b   :  { %168 = vmatprep.subr.bf16.mxu0 %v244_v0 }
  0x2e   :  { %169 = vmatpush1.bf16.msra.mxu0 %v239_v15 }
  0x2f   :  { %170 = vmatprep.subr.bf16.mxu0 %v244_v0 }
  0x32   :  { %171 = vmatpush1.bf16.msra.mxu0 %v144_v17 }
  0x35   :  { %179 = vmatmul.mubr.bf16.vlgmr.msra.gmra.mrb[0].mxu0 %v241_v18 }
  0x84   :  { %v47_v19 = vpop.permute.xlu0 %46 }
  0x88   :  { %v52_v22 = vpop.permute.xlu0 %51 }
 0x108   :  { %v180_v20 = vpop.f32.mrb[0].mxu0 }
 0x109   :  { %v182_v21 = vpop.f32.mrb[1].mxu0  ;;  %v181_v24 = vadd.f32 %v180_v20, %v47_v19 }
 0x10a   :  { %v183_v23 = vpop.f32.mrb[2].mxu0 }
 0x10b   :  { %v184_v25 = vadd.f32 %v183_v23, %v52_v22  ;;  %v185_v26 = vpop.f32.mrb[3].mxu0 }
 0x10d   :  { %v224_v27 = vpack.c.bf16 %v184_v25, %v181_v24 }
 0x10f   :  { %225 = vst [vmem:[%s322_s3] sm:$0xff] %v224_v27  }

// kernel: lenet_forward.5
= control target key start
LH: loop header
LB: loop body
LE: loop exit
PB: predicated region body
PF: predicated region fallthrough
CT: control target
= control target key end

     0   :  { %v774_v0 = vmov 0   ;;  %vm249_vm0 = vcmask 130048   ;;  %v775_v32 = vmov 0.0   ;;  %vm776_vm1 = vmmov 0   ;;  %s995_s1 = inlined_call_operand.vmem [shape: bf16[400,128], index: 1, kind: input, shape index: {}]   ;;  %s996_s0 = inlined_call_operand.vmem [shape: bf16[8,400], index: 0, kind: input, shape index: {}]   ;;  %s997_s3 = inlined_call_operand.vmem [shape: bf16[128,128], index: 3, kind: input, shape index: {}]   ;;  %s998_s5 = inlined_call_operand.vmem [shape: bf16[128,256], index: 5, kind: input, shape index: {}]   ;;  %s999_s2 = inlined_call_operand.vmem [shape: f32[1,128], index: 2, kind: input, shape index: {}]   ;;  %s1000_s4 = inlined_call_operand.vmem [shape: f32[1,128], index: 4, kind: input, shape index: {}]   ;;  %s1001_s6 = inlined_call_operand.vmem [shape: f32[1,256], index: 6, kind: input, shape index: {}]   ;;  %s1002_s7 = inlined_call_operand.vmem [shape: f32[8,256], index: 7, kind: output, shape index: {}]  }
   0x1   :  { %293 = vmatprep.subr.bf16.mxu1 %v774_v0  ;;  %v713_v1 = vld [vmem:[%s995_s1 + $0x40] sm:$0xff]   ;;  %v716_v4 = vld [vmem:[%s995_s1 + $0x48] sm:$0xff]   ;;  %v719_v7 = vld [vmem:[%s995_s1 + $0x50] sm:$0xff]  }
   0x2   :  { %v714_v2 = vld [vmem:[%s995_s1 + $0x80] sm:$0xff]   ;;  %659 = vmatprep.subr.bf16.mxu0 %v713_v1  ;;  %v717_v5 = vld [vmem:[%s995_s1 + $0x88] sm:$0xff]   ;;  %v720_v8 = vld [vmem:[%s995_s1 + $0x90] sm:$0xff]  }
   0x3   :  { %v715_v3 = vld [vmem:[%s995_s1] sm:$0xff]   ;;  %294 = vmatpush1.bf16.msra.mxu1 %v714_v2  ;;  %v718_v6 = vld [vmem:[%s995_s1 + $0x8] sm:$0xff]   ;;  %v721_v9 = vld [vmem:[%s995_s1 + $0x10] sm:$0xff]  }
   0x4   :  { %660 = vmatpush3.bf16.msra.mxu0 %v715_v3  ;;  %295 = vmatprep.subr.bf16.mxu1 %v774_v0  ;;  %v722_v10 = vld [vmem:[%s995_s1 + $0x58] sm:$0xff]   ;;  %v725_v13 = vld [vmem:[%s995_s1 + $0x60] sm:$0xff]   ;;  %v728_v16 = vld [vmem:[%s995_s1 + $0x68] sm:$0xff]  }
   0x5   :  { %661 = vmatprep.subr.bf16.mxu0 %v716_v4  ;;  %v723_v11 = vld [vmem:[%s995_s1 + $0x98] sm:$0xff]   ;;  %v726_v14 = vld [vmem:[%s995_s1 + $0xa0] sm:$0xff]   ;;  %v729_v17 = vld [vmem:[%s995_s1 + $0xa8] sm:$0xff]  }
   0x6   :  { %v724_v12 = vld [vmem:[%s995_s1 + $0x18] sm:$0xff]   ;;  %v727_v15 = vld [vmem:[%s995_s1 + $0x20] sm:$0xff]   ;;  %v730_v18 = vld [vmem:[%s995_s1 + $0x28] sm:$0xff]  }
   0x7   :  { %296 = vmatpush1.bf16.msra.mxu1 %v717_v5  ;;  %v731_v19 = vld [vmem:[%s995_s1 + $0x70] sm:$0xff]   ;;  %v27_v22 = vld [vmem:[%s996_s0] sm:$0xff]  ;;  %v734_v23 = vld [vmem:[%s995_s1 + $0x78] sm:$0xff]  }
   0x8   :  { %662 = vmatpush3.bf16.msra.mxu0 %v718_v6  ;;  %297 = vmatprep.subr.bf16.mxu1 %v774_v0  ;;  %v732_v20 = vld [vmem:[%s995_s1 + $0xb0] sm:$0xff]   ;;  %v605_v24 = vcombine.high %v27_v22, %v27_v22  ;;  %v28_v25 = vld [vmem:[%s996_s0 + $0x8] sm:$0xff]  ;;  %v735_v27 = vld [vmem:[%s995_s1 + $0xb8] sm:$0xff]   ;;  %v604_v30 = vcombine.low %v27_v22, %v27_v22 }
   0x9   :  { %663 = vmatprep.subr.bf16.mxu0 %v719_v7  ;;  %v733_v21 = vld [vmem:[%s995_s1 + $0x30] sm:$0xff]   ;;  %v607_v26 = vcombine.high %v28_v25, %v28_v25  ;;  %v736_v28 = vld [vmem:[%s995_s1 + $0x38] sm:$0xff]   ;;  %v739_v29 = vld [vmem:[%s995_s1 + $0xc0] sm:$0xff]   ;;  %v606_v33 = vcombine.low %v28_v25, %v28_v25 }
   0xa   :  { %285 = vmatprep.mubr.bf16.mxu0 %v605_v24  ;;  %v742_v31 = vld [vmem:[%s997_s3] sm:$0xff]   ;;  %v743_v34 = vld [vmem:[%s997_s3 + $0x8] sm:$0xff]   ;;  %v744_v35 = vld [vmem:[%s997_s3 + $0x10] sm:$0xff]  }
   0xb   :  { %298 = vmatpush1.bf16.msra.mxu1 %v720_v8  ;;  %633 = vmatprep.mubr.msk.bf16.mxu1 %vm249_vm0, %v607_v26  ;;  %v745_v36 = vld [vmem:[%s997_s3 + $0x18] sm:$0xff]   ;;  %v746_v37 = vld [vmem:[%s997_s3 + $0x20] sm:$0xff]   ;;  %v747_v38 = vld [vmem:[%s997_s3 + $0x28] sm:$0xff]  }
   0xc   :  { %664 = vmatpush3.bf16.msra.mxu0 %v721_v9  ;;  %299 = vmatprep.subr.bf16.mxu1 %v774_v0  ;;  %v748_v39 = vld [vmem:[%s997_s3 + $0x30] sm:$0xff]   ;;  %v749_v40 = vld [vmem:[%s997_s3 + $0x38] sm:$0xff]   ;;  %v750_v41 = vld [vmem:[%s998_s5] ss:$8 sps:$4 sm:$0xff]  }
   0xd   :  { %665 = vmatprep.subr.bf16.mxu0 %v722_v10  ;;  %v752_v42 = vld [vmem:[%s998_s5 + $0x4] ss:$8 sps:$4 sm:$0xff]   ;;  %v755_v43 = vld [vmem:[%s998_s5 + $0x14] ss:$8 sps:$4 sm:$0xff]   ;;  %v753_v44 = vld [vmem:[%s998_s5 + $0x10] ss:$8 sps:$4 sm:$0xff]  }
   0xe   :  { %v758_v45 = vld [vmem:[%s998_s5 + $0x24] ss:$8 sps:$4 sm:$0xff]   ;;  %v756_v46 = vld [vmem:[%s998_s5 + $0x20] ss:$8 sps:$4 sm:$0xff]   ;;  %v761_v47 = vld [vmem:[%s998_s5 + $0x34] ss:$8 sps:$4 sm:$0xff]  }
   0xf   :  { %300 = vmatpush1.bf16.msra.mxu1 %v723_v11  ;;  %v759_v48 = vld [vmem:[%s998_s5 + $0x30] ss:$8 sps:$4 sm:$0xff]   ;;  %v764_v49 = vld [vmem:[%s998_s5 + $0x44] ss:$8 sps:$4 sm:$0xff]   ;;  %v762_v50 = vld [vmem:[%s998_s5 + $0x40] ss:$8 sps:$4 sm:$0xff]  }
  0x10   :  { %666 = vmatpush3.bf16.msra.mxu0 %v724_v12  ;;  %301 = vmatprep.subr.bf16.mxu1 %v774_v0  ;;  %v767_v51 = vld [vmem:[%s998_s5 + $0x54] ss:$8 sps:$4 sm:$0xff]   ;;  %v765_v52 = vld [vmem:[%s998_s5 + $0x50] ss:$8 sps:$4 sm:$0xff]   ;;  %v770_v53 = vld [vmem:[%s998_s5 + $0x64] ss:$8 sps:$4 sm:$0xff]  }
  0x11   :  { %667 = vmatprep.subr.bf16.mxu0 %v725_v13  ;;  %v768_v54 = vld [vmem:[%s998_s5 + $0x60] ss:$8 sps:$4 sm:$0xff]   ;;  %v773_v5 = vld [vmem:[%s998_s5 + $0x74] ss:$8 sps:$4 sm:$0xff]   ;;  %v771_v6 = vld [vmem:[%s998_s5 + $0x70] ss:$8 sps:$4 sm:$0xff]  }
  0x12   :  { %v603_v57 = vld [vmem:[%s999_s2] ss:$0 sm:$0xff] }
  0x13   :  { %302 = vmatpush1.bf16.msra.mxu1 %v726_v14  ;;  %v634_v7 = vld [vmem:[%s1000_s4] ss:$0 sm:$0xff] }
  0x14   :  { %668 = vmatpush3.bf16.msra.mxu0 %v727_v15  ;;  %303 = vmatprep.subr.bf16.mxu1 %v774_v0  ;;  %v466_v15 = vlaneseq }
  0x15   :  { %669 = vmatprep.subr.bf16.mxu0 %v728_v16 }
  0x16   :  { %v467_v16 = vshrl.u32 %v466_v15, 7 }
  0x17   :  { %304 = vmatpush1.bf16.msra.mxu1 %v729_v17 }
  0x18   :  { %670 = vmatpush3.bf16.msra.mxu0 %v730_v18  ;;  %305 = vmatprep.subr.bf16.mxu1 %v774_v0  ;;  %v468_v17 = vsub.s32 0, %v467_v16  ;;  %v464_v18 = vld [vmem:[%s1001_s6] sm:$0x3] }
  0x19   :  { %671 = vmatprep.subr.bf16.mxu0 %v731_v19  ;;  %v472_v19 = vsub.s32 1, %v467_v16 }
  0x1b   :  { %306 = vmatpush1.bf16.msra.mxu1 %v732_v20  ;;  %v469_v20 = vrot.slane %v464_v18, %v468_v17 }
  0x1c   :  { %672 = vmatpush3.bf16.msra.mxu0 %v733_v21  ;;  %307 = vmatprep.subr.bf16.mxu1 %v774_v0  ;;  %v473_v21 = vrot.slane %v464_v18, %v472_v19 }
  0x1d   :  { %673 = vmatprep.subr.bf16.mxu0 %v734_v23 }
  0x1f   :  { %308 = vmatpush1.bf16.msra.mxu1 %v735_v27 }
  0x20   :  { %674 = vmatpush3.bf16.msra.mxu0 %v736_v28  ;;  %309 = vmatprep.subr.bf16.mxu1 %v774_v0 }
  0x21   :  { %690 = vmatprep.subr.bf16.mxu0 %v775_v32 }
  0x23   :  { %286 = vmatmul.mubr.bf16.vlgmr.msra.gmra.mrb[0].mxu0 %v604_v30  ;;  %310 = vmatpush1.bf16.msra.mxu1 %v739_v29 }
  0x24   :  { %691 = vmatpush3.bf16.msra.mxu0 %v742_v31  ;;  %706 = vmatprep.mubr.msk.bf16.mxu0 %vm776_vm1, %v775_v32 }
  0x25   :  { %692 = vmatprep.subr.bf16.mxu0 %v775_v32  ;;  %556 = vmatprep.subr.bf16.mxu1 %v752_v42 }
  0x26   :  { %326 = vmatmul.mubr.bf16.vlgmr.msra.gmra.mrb[0].mxu1 %v606_v33 }
  0x27   :  { %588 = vmatprep.mubr.bf16.mxu1 %v774_v0  ;;  %557 = vmatpush1.bf16.msra.mxu1 %v750_v41 }
  0x28   :  { %693 = vmatpush3.bf16.msra.mxu0 %v743_v34  ;;  %558 = vmatprep.subr.bf16.mxu1 %v755_v43 }
  0x29   :  { %694 = vmatprep.subr.bf16.mxu0 %v775_v32 }
  0x2b   :  { %559 = vmatpush1.bf16.msra.mxu1 %v753_v44 }
  0x2c   :  { %695 = vmatpush3.bf16.msra.mxu0 %v744_v35  ;;  %560 = vmatprep.subr.bf16.mxu1 %v758_v45 }
  0x2d   :  { %696 = vmatprep.subr.bf16.mxu0 %v775_v32 }
  0x2f   :  { %561 = vmatpush1.bf16.msra.mxu1 %v756_v46 }
  0x30   :  { %697 = vmatpush3.bf16.msra.mxu0 %v745_v36  ;;  %562 = vmatprep.subr.bf16.mxu1 %v761_v47 }
  0x31   :  { %698 = vmatprep.subr.bf16.mxu0 %v775_v32 }
  0x33   :  { %563 = vmatpush1.bf16.msra.mxu1 %v759_v48 }
  0x34   :  { %699 = vmatpush3.bf16.msra.mxu0 %v746_v37  ;;  %564 = vmatprep.subr.bf16.mxu1 %v764_v49 }
  0x35   :  { %700 = vmatprep.subr.bf16.mxu0 %v775_v32 }
  0x37   :  { %565 = vmatpush1.bf16.msra.mxu1 %v762_v50 }
  0x38   :  { %701 = vmatpush3.bf16.msra.mxu0 %v747_v38  ;;  %566 = vmatprep.subr.bf16.mxu1 %v767_v51 }
  0x39   :  { %702 = vmatprep.subr.bf16.mxu0 %v775_v32 }
  0x3b   :  { %567 = vmatpush1.bf16.msra.mxu1 %v765_v52 }
  0x3c   :  { %703 = vmatpush3.bf16.msra.mxu0 %v748_v39  ;;  %568 = vmatprep.subr.bf16.mxu1 %v770_v53 }
  0x3d   :  { %704 = vmatprep.subr.bf16.mxu0 %v775_v32 }
  0x3f   :  { %569 = vmatpush1.bf16.msra.mxu1 %v768_v54 }
  0x40   :  { %705 = vmatpush3.bf16.msra.mxu0 %v749_v40  ;;  %570 = vmatprep.subr.bf16.mxu1 %v773_v5 }
  0x43   :  { %571 = vmatpush1.bf16.msra.mxu1 %v771_v6 }
  0xf6   :  { %v675_v55 = vpop.f32.mrb[0].mxu0 }
  0xf7   :  { %v676_v56 = vpop.f32.mrb[1].mxu0 }
  0xf8   :  { %v677_v58 = vadd.f32 %v676_v56, %v675_v55  ;;  %v678_v59 = vpop.f32.mrb[2].mxu0 }
  0xf9   :  { %v679_v60 = vpop.f32.mrb[3].mxu0  ;;  %v327_v61 = vpop.f32.mrb[0].mxu1 }
  0xfa   :  { %v288_v62 = vadd.f32 %v677_v58, %v603_v57  ;;  %v329_v63 = vpop.f32.mrb[1].mxu1 }
  0xfb   :  { %v330_v0 = vpop.f32.mrb[2].mxu1 }
  0xfc   :  { %v328_v1 = vadd.f32 %v327_v61, %v288_v62  ;;  %v331_v2 = vpop.f32.mrb[3].mxu1 }
  0xfe   :  { %v333_v3 = vmax.f32 %v328_v1, 0.0 }
 0x100   :  { %v334_v4 = vpack.c.bf16 %v333_v3, %v333_v3 }
 0x102   :  { %707 = vmatmul.mubr.bf16.vlgmr.msra.gmra.mrb[4].mxu0 %v334_v4 }
 0x1d5   :  { %v440_v8 = vpop.f32.mrb[4].mxu0 }
 0x1d6   :  { %v441_v9 = vadd.f32 %v634_v7, %v440_v8  ;;  %v708_v10 = vpop.f32.mrb[5].mxu0 }
 0x1d7   :  { %v443_v11 = vpop.f32.mrb[6].mxu0 }
 0x1d8   :  { %v446_v12 = vmax.f32 %v441_v9, 0.0  ;;  %v709_v13 = vpop.f32.mrb[7].mxu0 }
 0x1da   :  { %v447_v14 = vpack.c.bf16 %v446_v12, %v446_v12 }
 0x1dc   :  { %589 = vmatmul.mubr.bf16.vlgmr.msra.gmra.mrb[4].mxu1 %v447_v14 }
 0x2af   :  { %v590_v22 = vpop.f32.mrb[4].mxu1 }
 0x2b0   :  { %v591_v23 = vadd.f32 %v590_v22, %v469_v20  ;;  %v592_v24 = vpop.f32.mrb[5].mxu1 }
 0x2b1   :  { %v593_v25 = vadd.f32 %v592_v24, %v473_v21  ;;  %v594_v26 = vpop.f32.mrb[6].mxu1 }
 0x2b2   :  { %597 = vst [vmem:[%s1002_s7] sm:$0xff] %v591_v23  ;;  %v595_v27 = vpop.f32.mrb[7].mxu1 }
 0x2b3   :  { %598 = vst [vmem:[%s1002_s7 + $0x8] sm:$0xff] %v593_v25 }

</bundles_post_ra>
